<compile_context>
chip_gen: v5e
topology: v5e:2x2
jax: 0.10.0
libtpu: 0.0.40
codegen_flags: <defaults>
</compile_context>

<pallas_src>
import functools
import math

import jax
import jax.numpy as jnp
from jax.experimental import pallas as pl
from jax.experimental.pallas import tpu as pltpu


def _neg_contrastive_kernel(cos_ref, y_ref, out_ref, acc_ref, *,
                            s, n_cols, mask_cols, lane_strips):
    """Grid = (row_blocks [parallel], class_blocks [arbitrary, last]).

    Per step: take a (br, bc) tile of cosine, emulate the scatter of -1 into
    the true-class column, exponentiate, and fold the lane strips into a
    (br, 128) VMEM accumulator.  On the last class tile do the 128->1 reduce
    and write log(1 + row_sum) to the per-row output block.
    """
    j = pl.program_id(1)

    cos = cos_ref[...].astype(jnp.float32)          # (br, bc) f32 (upcast if bf16)
    y = y_ref[...]                                  # (br, 1) int32
    br, bc = cos.shape

    # Loop-invariant lane iota; shift the label instead of the iota.
    col = jax.lax.broadcasted_iota(jnp.int32, (br, bc), 1)
    y_local = y - j * bc                            # (br, 1) scalar adjust
    # scatter(dim=1, index=y, value=-1): replace the true-class column.
    cos_neg = jnp.where(col == y_local, jnp.float32(-1.0), cos)
    sx = cos_neg * jnp.float32(s)
    if mask_cols:
        # Padded tail columns of the last class tile -> exp(-inf) == 0.
        sx = jnp.where(col < (n_cols - j * bc), sx, jnp.float32(-jnp.inf))
    z = jnp.exp(sx)                                 # (br, bc) f32

    if lane_strips:
        # bc is a multiple of 128: accumulate lane strips with VPU adds only.
        @pl.when(j == 0)
        def _():
            acc_ref[...] = jnp.zeros_like(acc_ref)

        acc = acc_ref[...]
        for k in range(bc // 128):
            acc = acc + z[:, k * 128:(k + 1) * 128]
        acc_ref[...] = acc

        @pl.when(j == pl.num_programs(1) - 1)
        def _():
            out_ref[...] = jnp.log(
                jnp.sum(acc_ref[...], axis=-1, keepdims=True) + jnp.float32(1.0))
    else:
        # Single class tile whose width is not a multiple of 128 (bc == C):
        # reduce directly, no accumulator needed.
        out_ref[...] = jnp.log(
            jnp.sum(z, axis=-1, keepdims=True) + jnp.float32(1.0))


def negative_contrastive(cosine, y_true, eta=0.999,
                         block_rows=512, block_cols=2048):
    """cosine: (N, C) float (f32 or bf16), y_true: (N,) int — scalar f32 loss."""
    N, C = cosine.shape
    s = math.log(eta / (1.0 - eta) * C)
    y2 = y_true.astype(jnp.int32).reshape(N, 1)

    itemsize = jnp.dtype(cosine.dtype).itemsize
    row_mult = {4: 8, 2: 16, 1: 32}.get(itemsize, 8)

    # Legal tiles: sublane dim a multiple of the dtype packing (8/16/32),
    # lane dim a multiple of 128, unless equal to the full array extent.
    block_rows = max(row_mult, (block_rows // row_mult) * row_mult)
    block_cols = max(128, (block_cols // 128) * 128)

    # Chip-aware VMEM budget (v7x: 64 MiB per TensorCore, v5e/v6e: 128 MiB).
    try:
        vmem_cap = int(getattr(pltpu.get_tpu_info(), "vmem_capacity_bytes",
                               64 << 20))
    except Exception:
        vmem_cap = 64 << 20
    vmem_budget = max(16 << 20, vmem_cap - (8 << 20))

    def footprint(br_, bc_):
        return (2 * br_ * bc_ * itemsize      # double-buffered cosine tile
                + 6 * br_ * 128 * 4           # y / out / acc (lane padded)
                + (2 << 20))                  # internal scratch headroom

    # Shrink the requested tile until it fits the real chip budget.
    while footprint(block_rows, block_cols) > vmem_budget and block_cols > 512:
        block_cols = max(128, (block_cols // 2 // 128) * 128)
    while footprint(block_rows, block_cols) > vmem_budget and block_rows > row_mult:
        block_rows = max(row_mult, (block_rows // 2 // row_mult) * row_mult)

    # Row tile: if everything fits in one block, still split into >= 2 row
    # blocks so the "parallel" axis can shard across v7x's two TensorCores.
    if N <= block_rows:
        half = -(-N // 2)                              # cdiv(N, 2)
        half = -(-half // row_mult) * row_mult         # round up to row_mult
        br = half if (half < N and N > row_mult) else N
    else:
        br = block_rows

    bc = C if C <= block_cols else block_cols
    mask_cols = (C % bc) != 0
    lane_strips = (bc % 128) == 0
    grid = (pl.cdiv(N, br), pl.cdiv(C, bc))

    kernel = functools.partial(
        _neg_contrastive_kernel,
        s=s, n_cols=C, mask_cols=mask_cols, lane_strips=lane_strips)

    vmem_limit = int(min(max(footprint(br, bc) + (4 << 20), 16 << 20),
                         vmem_budget))

    per_row = pl.pallas_call(
        kernel,
        out_shape=jax.ShapeDtypeStruct((N, 1), jnp.float32),
        grid_spec=pltpu.PrefetchScalarGridSpec(
            num_scalar_prefetch=0,
            grid=grid,
            in_specs=[
                pl.BlockSpec((br, bc), lambda i, j: (i, j)),
                pl.BlockSpec((br, 1), lambda i, j: (i, 0)),
            ],
            out_specs=pl.BlockSpec((br, 1), lambda i, j: (i, 0)),
            scratch_shapes=[pltpu.VMEM((br, 128), jnp.float32)],
        ),
        compiler_params=pltpu.CompilerParams(
            dimension_semantics=("parallel", "arbitrary"),
            vmem_limit_bytes=vmem_limit,
        ),
    )(cosine, y2)

    return jnp.sum(per_row) / jnp.float32(N)


def _reference(cosine, y_true, eta=0.999):
    N, C = cosine.shape
    s = math.log(eta / (1.0 - eta) * C)
    col = jnp.arange(C)[None, :]
    cos_neg = jnp.where(col == y_true[:, None], -1.0,
                        cosine.astype(jnp.float32))
    return jnp.mean(jnp.log(jnp.sum(jnp.exp(cos_neg * s), axis=-1) + 1.0))


if __name__ == "__main__":
    key = jax.random.PRNGKey(0)
    k1, k2, k3, k4 = jax.random.split(key, 4)

    # --- main check: f32, splits into 2 row blocks -------------------------
    N, C = 16, 128
    cosine = jax.random.uniform(k1, (N, C), jnp.float32, minval=-1.0, maxval=1.0)
    y_true = jax.random.randint(k2, (N,), 0, C)
    loss = jax.block_until_ready(negative_contrastive(cosine, y_true))
    ref = _reference(cosine, y_true)
    assert jnp.allclose(loss, ref, rtol=1e-5, atol=1e-5), (loss, ref)

    # --- masked / multi-tile check: N, C not multiples of the tile sizes ---
    N2, C2 = 20, 200
    cos2 = jax.random.uniform(k3, (N2, C2), jnp.float32, minval=-1.0, maxval=1.0)
    y2 = jax.random.randint(k4, (N2,), 0, C2)
    loss2 = jax.block_until_ready(
        negative_contrastive(cos2, y2, block_rows=8, block_cols=128))
    ref2 = _reference(cos2, y2)
    assert jnp.allclose(loss2, ref2, rtol=1e-5, atol=1e-5), (loss2, ref2)

    # --- bf16 input path (bf16 in HBM/VMEM, upcast to f32 in-kernel) -------
    cos_bf = cosine.astype(jnp.bfloat16)
    loss_bf = jax.block_until_ready(negative_contrastive(cos_bf, y_true))
    ref_bf = _reference(cos_bf.astype(jnp.float32), y_true)
    assert jnp.allclose(loss_bf, ref_bf, rtol=1e-4, atol=1e-4), (loss_bf, ref_bf)

    print("KERNEL_OK")
</pallas_src>

<mosaic_0001>
module attributes {stable_mosaic.version = 11 : i64} {
  func.func @_neg_contrastive_kernel(%arg0: i32, %arg1: i32, %arg2: memref<8x128xf32, #tpu.memory_space<vmem>>, %arg3: memref<8x1xi32, #tpu.memory_space<vmem>>, %arg4: memref<8x1xf32, #tpu.memory_space<vmem>>, %arg5: memref<8x128xf32, #tpu.memory_space<vmem>>) attributes {dimension_semantics = [#tpu.dimension_semantics<parallel>, #tpu.dimension_semantics<arbitrary>], iteration_bounds = array<i64: 2, 1>, scalar_prefetch = 0 : i64, scratch_operands = 1 : i64, tpu.core_type = #tpu.core_type<tc>, window_params = [{transform_indices = @transform_0, window_bounds = array<i64: 8, 128>}, {transform_indices = @transform_1, window_bounds = array<i64: 8, 1>}, {transform_indices = @transform_2, window_bounds = array<i64: 8, 1>}]} {
    %c0 = arith.constant 0 : index
    %c0_0 = arith.constant 0 : index
    %0 = vector.load %arg2[%c0, %c0_0] : memref<8x128xf32, #tpu.memory_space<vmem>>, vector<8x128xf32>
    %c0_1 = arith.constant 0 : index
    %c0_2 = arith.constant 0 : index
    %1 = vector.load %arg3[%c0_1, %c0_2] : memref<8x1xi32, #tpu.memory_space<vmem>>, vector<8x1xi32>
    %2 = tpu.iota {dimensions = array<i32: 1>} : vector<8x128xi32>
    %c128_i32 = arith.constant 128 : i32
    %3 = arith.muli %arg1, %c128_i32 : i32
    %4 = vector.broadcast %3 : i32 to vector<8x1xi32>
    %5 = arith.subi %1, %4 : vector<8x1xi32>
    %6 = vector.broadcast %5 : vector<8x1xi32> to vector<8x128xi32>
    %7 = arith.cmpi eq, %2, %6 : vector<8x128xi32>
    %cst = arith.constant -1.000000e+00 : f32
    %8 = vector.broadcast %cst : f32 to vector<8x128xf32>
    %9 = arith.select %7, %8, %0 : vector<8x128xi1>, vector<8x128xf32>
    %cst_3 = arith.constant 11.7587852 : f32
    %10 = vector.broadcast %cst_3 : f32 to vector<8x128xf32>
    %11 = arith.mulf %9, %10 : vector<8x128xf32>
    %12 = math.exp %11 : vector<8x128xf32>
    %c0_i32 = arith.constant 0 : i32
    %13 = arith.cmpi eq, %arg1, %c0_i32 : i32
    %14 = arith.extui %13 : i1 to i32
    %c0_i32_4 = arith.constant 0 : i32
    %15 = arith.cmpi ne, %14, %c0_i32_4 : i32
    scf.if %15 {
      %cst_11 = arith.constant 0.000000e+00 : f32
      %22 = vector.broadcast %cst_11 : f32 to vector<8x128xf32>
      %c0_12 = arith.constant 0 : index
      %c0_13 = arith.constant 0 : index
      %23 = vector.load %arg5[%c0_12, %c0_13] : memref<8x128xf32, #tpu.memory_space<vmem>>, vector<8x128xf32>
      tpu.vector_store %arg5[%c0_12, %c0_13], %22 {strides = array<i32>} : memref<8x128xf32, #tpu.memory_space<vmem>>, vector<8x128xf32>,
    } else {
    }
    %c0_5 = arith.constant 0 : index
    %c0_6 = arith.constant 0 : index
    %16 = vector.load %arg5[%c0_5, %c0_6] : memref<8x128xf32, #tpu.memory_space<vmem>>, vector<8x128xf32>
    %17 = arith.addf %16, %12 : vector<8x128xf32>
    %c0_7 = arith.constant 0 : index
    %c0_8 = arith.constant 0 : index
    %18 = vector.load %arg5[%c0_7, %c0_8] : memref<8x128xf32, #tpu.memory_space<vmem>>, vector<8x128xf32>
    tpu.vector_store %arg5[%c0_7, %c0_8], %17 {strides = array<i32>} : memref<8x128xf32, #tpu.memory_space<vmem>>, vector<8x128xf32>,
    %c0_i32_9 = arith.constant 0 : i32
    %19 = arith.cmpi eq, %arg1, %c0_i32_9 : i32
    %20 = arith.extui %19 : i1 to i32
    %c0_i32_10 = arith.constant 0 : i32
    %21 = arith.cmpi ne, %20, %c0_i32_10 : i32
    scf.if %21 {
      %c0_11 = arith.constant 0 : index
      %c0_12 = arith.constant 0 : index
      %22 = vector.load %arg5[%c0_11, %c0_12] : memref<8x128xf32, #tpu.memory_space<vmem>>, vector<8x128xf32>
      %cst_13 = arith.constant dense<0.000000e+00> : vector<8xf32>
      %23 = vector.multi_reduction <add>, %22, %cst_13 [1] : vector<8x128xf32> to vector<8xf32>
      %24 = vector.shape_cast %23 : vector<8xf32> to vector<8x1xf32>
      %cst_14 = arith.constant 1.000000e+00 : f32
      %25 = vector.broadcast %cst_14 : f32 to vector<8x1xf32>
      %26 = arith.addf %24, %25 : vector<8x1xf32>
      %27 = math.log %26 : vector<8x1xf32>
      %c0_15 = arith.constant 0 : index
      %c0_16 = arith.constant 0 : index
      %28 = vector.load %arg4[%c0_15, %c0_16] : memref<8x1xf32, #tpu.memory_space<vmem>>, vector<8x1xf32>
      tpu.vector_store %arg4[%c0_15, %c0_16], %27 {strides = array<i32>} : memref<8x1xf32, #tpu.memory_space<vmem>>, vector<8x1xf32>,
    } else {
    }
    return
  }
  func.func @transform_0(%arg0: i32, %arg1: i32) -> (i32, i32) {
    %c0_i32 = arith.constant 0 : i32
    return %arg0, %arg1 : i32, i32
  }
  func.func @transform_1(%arg0: i32, %arg1: i32) -> (i32, i32) {
    %c0_i32 = arith.constant 0 : i32
    %c0_i32_0 = arith.constant 0 : i32
    return %arg0, %c0_i32 : i32, i32
  }
  func.func @transform_2(%arg0: i32, %arg1: i32) -> (i32, i32) {
    %c0_i32 = arith.constant 0 : i32
    %c0_i32_0 = arith.constant 0 : i32
    return %arg0, %c0_i32 : i32, i32
  }
}

</mosaic_0001>

<bundles_post_ra>
// kernel: tpu_custom_call.1
= control target key start
LH: loop header
LB: loop body
LE: loop exit
PB: predicated region body
PF: predicated region fallthrough
CT: control target
= control target key end

     0   :  { %s369_s9 = smov 0   ;;  %s371_s10 = smov 0   ;;  %s405_s0 = inlined_call_operand.vmem [shape: f32[16,128], index: 0, kind: input, shape index: {}]   ;;  %s406_s1 = inlined_call_operand.vmem [shape: s32[16,1], index: 1, kind: input, shape index: {}]   ;;  %s407_s2 = inlined_call_operand.vmem [shape: f32[16,1], index: 2, kind: output, shape index: {}]  }
   0x1   :  { %s373_s11 = smov 0  }
   0x2 LB: > { %s24_s12 = sadd.s32 1, %s347_s10  ;;  %p293_p0 = scmp.ge.s32.totalorder %s351_s11, 1  ;;  %s351_s11 = sphi %s373_s11, %s12_s11   ;;  %s347_s10 = sphi %s371_s10, %s409_s10   ;;  %s343_s9 = sphi %s369_s9, %s408_s9  }
   0x3   : > { %p26_p1 = scmp.ge.s32.totalorder %s24_s12, 2  ;;  %p137_p2 = scmp.lt.s32.totalorder %s351_s11, 3 }
   0x5   : > { %s411_s12 = smov (%p26_p1, %s24_s12), 0  ;;  %p138_p3 = pnand %p293_p0, %p137_p2 }
   0x6   : > { %p164_p4 = scmp.lt.s32.totalorder (!%p138_p3), %s343_s9, 1 }
   0x7   : > { %141 = sbr.rel (%p138_p3) target bundleno = 272 (0x110), region = 28 }
   0xc   : > { %v353_v0 = vmov 0   ;;  %s413_s9 = smov (!%p164_p4, %s343_s9), 1  ;;  %v181_v2 = vlaneseq  ;;  %vm211_vm1 = vcmask 7168  }
   0xd   : > { %324 = vset.pattern.permute.xlu0 %v353_v0  ;;  %s294_s13 = sshll.u32 %s413_s9, 3 }
   0xe   : > { %s174_s16 = scalar_lea.vmem %s406_s1, %s294_s13  ;;  %s170_s19 = scalar_lea.vmem %s405_s0, %s294_s13  ;;  %v182_v3 = vand.u32 127, %v181_v2 }
   0xf   : > { %v180_v1 = vld [vmem:[%s174_s16] sm:$0xff]  ;;  %s178_s22 = scalar_lea.vmem %s407_s2, %s294_s13 }
  0x10   : > { %187 = vperm.xlu0 %324, %v180_v1   ;;  %v179_v4 = vld [vmem:[%s170_s19] sm:$0xff] }
  0x82   : > { %v188_v5 = vpop.permute.xlu0 %187 }
  0x83   : > { %vm189_vm0 = vcmp.eq.s32.totalorder %v182_v3, %v188_v5 }
  0x84   : > { %v190_v6 = vsel %vm189_vm0, -1.0, %v179_v4 }
  0x85   : > { %v191_v7 = vmul.f32 11.758785, %v190_v6 }
  0x87   : > { %v192_v8 = vmul.f32 1.442695, %v191_v7 }
  0x89   : > { %325 = vpow2.f32 %v192_v8 }
  0x8f   : > { %v326_v9 = vpop.eup %325 }
  0x90   : > { %206 = vadd.xlane.f32.xlu0 %v326_v9 }
 0x103   : > { %v207_v10 = vpop.xlane.xlu0 %206 }
 0x104   : > { %v208_v11 = vadd.f32 1.0, %v207_v10 }
 0x106   : > { %327 = vlog2.f32 %v208_v11 }
 0x10c   : > { %v328_v12 = vpop.eup %327 }
 0x10d   : > { %v210_v13 = vmul.f32 0.6931472, %v328_v12 }
 0x10f   : > { %212 = vst.msk [vmem:[%s178_s22] sm:$0xff] %vm211_vm1, %v210_v13 }
 0x110 PF: > { %s12_s11 = sadd.s32 1, %s351_s11   ;;  %s408_s9 = smov %s347_s10 }
 0x111   : > { %p9_p5 = scmp.ge.s32.totalorder %s12_s11, 4   ;;  %s409_s10 = smov %s411_s12 }
 0x113   :  { %11 = sbr.rel (!%p9_p5) target bundleno = 2 (0x2), region = 69 }

</bundles_post_ra>
